<compile_context>
chip_gen: v7x
topology: tpu7x:2x2x1
jax: 0.10.0
libtpu: 0.0.40
codegen_flags: <defaults>
</compile_context>

<pallas_src>
import functools

import jax
import jax.numpy as jnp
from jax.experimental import pallas as pl
from jax.experimental.pallas import tpu as pltpu


def conv3x3_lrelu_kernel(x_ref, w_ref, b_ref, mask_ref, o_ref, buf_ref,
                         *, H, W, C, M):
    # x_ref:    (1, C, H*W)        one batch element, spatial flattened on lanes
    # w_ref:    (C, 9*C)           w[co, (dy*3+dx)*C + ci]
    # b_ref:    (C, 1)
    # mask_ref: (2, H*W)           row 0: valid to sample w-1, row 1: w+1
    # o_ref:    (1, C, H*W)
    # buf_ref:  (C, H*W + 2*M)     zero-margined staging buffer (VMEM scratch)
    HW = H * W

    # Stage the plane with zero margins: vertical (row) halo taps land in the
    # zero margin, horizontal halo taps are handled with the column masks.
    buf_ref[...] = jnp.zeros_like(buf_ref)
    buf_ref[:, M:M + HW] = x_ref[0]
    buf = buf_ref[...]                                   # (C, HW + 2M)

    w = w_ref[...]                                       # (C, 9*C)
    masks = mask_ref[...]                                # (2, HW)
    left_ok = masks[0:1, :]                              # (1, HW)
    right_ok = masks[1:2, :]                             # (1, HW)

    acc = jnp.zeros((C, HW), jnp.float32)
    for oy in (-1, 0, 1):
        for ox in (-1, 0, 1):
            s = oy * W + ox
            shifted = buf[:, M + s:M + s + HW]           # (C, HW) static slice
            if ox == -1:
                shifted = shifted * left_ok
            elif ox == 1:
                shifted = shifted * right_ok
            t = (oy + 1) * 3 + (ox + 1)
            w_t = w[:, t * C:(t + 1) * C]                # (Cout, Cin)
            acc = acc + jnp.dot(w_t, shifted,
                                preferred_element_type=jnp.float32)

    acc = acc + b_ref[...]                               # (C, 1) broadcast
    out = jnp.where(acc >= 0.0, acc, 0.2 * acc)          # LeakyReLU(0.2)
    o_ref[...] = out.astype(o_ref.dtype)[None]


def conv_layer_forward(x_nchw, w_oihw, b):
    """ConvLayer.forward: Conv2d(C, C, 3, stride=1, pad=1) + LeakyReLU(0.2)."""
    N, C, H, W = x_nchw.shape
    HW = H * W
    # Lane-aligned zero margin; must be >= W + 1 for the halo trick.
    M = ((W + 1 + 127) // 128) * 128

    x_flat = x_nchw.reshape(N, C, HW).astype(jnp.float32)       # free reshape
    # Pack weights as one 2-D tile: (Cout, 9*Cin), taps in (dy, dx) order.
    w_packed = jnp.transpose(w_oihw, (0, 2, 3, 1)).reshape(C, 9 * C)
    w_packed = w_packed.astype(jnp.float32)
    b2 = b.reshape(C, 1).astype(jnp.float32)

    # 0/1 column-validity masks for the dx = -1 / +1 taps (constants).
    col = jnp.arange(HW, dtype=jnp.int32) % W
    edge_masks = jnp.stack(
        [(col >= 1).astype(jnp.float32),          # sampling column w-1 valid
         (col <= W - 2).astype(jnp.float32)],     # sampling column w+1 valid
        axis=0)                                   # (2, HW)

    kern = functools.partial(conv3x3_lrelu_kernel, H=H, W=W, C=C, M=M)

    # TODO(synk): for large H*W*C, tile H (with a 1-row halo per tile) so the
    # per-step working set stays within v7x's 64 MiB VMEM budget.
    out_flat = pl.pallas_call(
        kern,
        out_shape=jax.ShapeDtypeStruct((N, C, HW), jnp.float32),
        grid=(N,),
        in_specs=[
            pl.BlockSpec((1, C, HW), lambda n: (n, 0, 0)),
            pl.BlockSpec((C, 9 * C), lambda n: (0, 0)),
            pl.BlockSpec((C, 1), lambda n: (0, 0)),
            pl.BlockSpec((2, HW), lambda n: (0, 0)),
        ],
        out_specs=pl.BlockSpec((1, C, HW), lambda n: (n, 0, 0)),
        scratch_shapes=[pltpu.VMEM((C, HW + 2 * M), jnp.float32)],
        compiler_params=pltpu.CompilerParams(
            dimension_semantics=("parallel",)),
    )(x_flat, w_packed, b2, edge_masks)

    return out_flat.reshape(N, C, H, W)


def _reference(x_nchw, w_oihw, b):
    # Pure-JAX reference for correctness checking.
    y = jax.lax.conv_general_dilated(
        x_nchw.astype(jnp.float32), w_oihw.astype(jnp.float32),
        window_strides=(1, 1), padding="SAME",
        dimension_numbers=("NCHW", "OIHW", "NCHW"))
    y = y + b[None, :, None, None]
    return jnp.where(y >= 0.0, y, 0.2 * y)


if __name__ == "__main__":
    # Small shapes consistent with the module: batch=2, channels=4, spatial=16.
    N, C, H, W = 2, 4, 16, 16
    key = jax.random.PRNGKey(0)
    kx, kw, kb = jax.random.split(key, 3)

    # Deterministic parameter init mimicking PyTorch Conv2d defaults:
    # uniform(-1/sqrt(fan_in), 1/sqrt(fan_in)), fan_in = C*3*3. Weight in OIHW.
    fan_in = C * 3 * 3
    bound = 1.0 / (fan_in ** 0.5)
    w_oihw = jax.random.uniform(kw, (C, C, 3, 3), jnp.float32, -bound, bound)
    bias = jax.random.uniform(kb, (C,), jnp.float32, -bound, bound)
    x = jax.random.normal(kx, (N, C, H, W), jnp.float32)

    out = conv_layer_forward(x, w_oihw, bias)
    out = jax.block_until_ready(out)

    ref = _reference(x, w_oihw, bias)
    assert out.shape == (N, C, H, W)
    assert jnp.allclose(out, ref, atol=1e-4, rtol=1e-4)

    print("KERNEL_OK")
</pallas_src>

<mosaic_0001>
module attributes {stable_mosaic.version = 11 : i64} {
  func.func @conv3x3_lrelu_kernel(%arg0: i32, %arg1: memref<1x4x256xf32, #tpu.memory_space<vmem>>, %arg2: memref<4x36xf32, #tpu.memory_space<vmem>>, %arg3: memref<4x1xf32, #tpu.memory_space<vmem>>, %arg4: memref<2x256xf32, #tpu.memory_space<vmem>>, %arg5: memref<1x4x256xf32, #tpu.memory_space<vmem>>, %arg6: memref<4x512xf32, #tpu.memory_space<vmem>>) attributes {dimension_semantics = [#tpu.dimension_semantics<parallel>], iteration_bounds = array<i64: 2>, scalar_prefetch = 0 : i64, scratch_operands = 1 : i64, tpu.core_type = #tpu.core_type<tc>, window_params = [{transform_indices = @transform_0, window_bounds = array<i64: 1, 4, 256>}, {pipeline_mode = #tpu.pipeline_mode<synchronous>, transform_indices = @transform_1, window_bounds = array<i64: 4, 36>}, {pipeline_mode = #tpu.pipeline_mode<synchronous>, transform_indices = @transform_2, window_bounds = array<i64: 4, 1>}, {pipeline_mode = #tpu.pipeline_mode<synchronous>, transform_indices = @transform_3, window_bounds = array<i64: 2, 256>}, {transform_indices = @transform_4, window_bounds = array<i64: 1, 4, 256>}]} {
    %cst = arith.constant 0.000000e+00 : f32
    %0 = vector.broadcast %cst : f32 to vector<4x512xf32>
    %c0 = arith.constant 0 : index
    %c0_0 = arith.constant 0 : index
    %1 = vector.load %arg6[%c0, %c0_0] : memref<4x512xf32, #tpu.memory_space<vmem>>, vector<4x512xf32>
    tpu.vector_store %arg6[%c0, %c0_0], %0 {strides = array<i32>} : memref<4x512xf32, #tpu.memory_space<vmem>>, vector<4x512xf32>,
    %c0_1 = arith.constant 0 : index
    %c0_2 = arith.constant 0 : index
    %c0_3 = arith.constant 0 : index
    %2 = vector.load %arg1[%c0_1, %c0_2, %c0_3] : memref<1x4x256xf32, #tpu.memory_space<vmem>>, vector<1x4x256xf32>
    %3 = vector.shape_cast %2 : vector<1x4x256xf32> to vector<4x256xf32>
    %c0_4 = arith.constant 0 : index
    %c128 = arith.constant 128 : index
    %4 = vector.load %arg6[%c0_4, %c128] : memref<4x512xf32, #tpu.memory_space<vmem>>, vector<4x256xf32>
    tpu.vector_store %arg6[%c0_4, %c128], %3 {strides = array<i32>} : memref<4x512xf32, #tpu.memory_space<vmem>>, vector<4x256xf32>,
    %c0_5 = arith.constant 0 : index
    %c0_6 = arith.constant 0 : index
    %5 = vector.load %arg6[%c0_5, %c0_6] : memref<4x512xf32, #tpu.memory_space<vmem>>, vector<4x512xf32>
    %c0_7 = arith.constant 0 : index
    %c0_8 = arith.constant 0 : index
    %6 = vector.load %arg2[%c0_7, %c0_8] : memref<4x36xf32, #tpu.memory_space<vmem>>, vector<4x36xf32>
    %c0_9 = arith.constant 0 : index
    %c0_10 = arith.constant 0 : index
    %7 = vector.load %arg4[%c0_9, %c0_10] : memref<2x256xf32, #tpu.memory_space<vmem>>, vector<2x256xf32>
    %8 = vector.extract_strided_slice %7 {offsets = [0, 0], sizes = [1, 256], strides = [1, 1]} : vector<2x256xf32> to vector<1x256xf32>
    %9 = vector.extract_strided_slice %7 {offsets = [1, 0], sizes = [1, 256], strides = [1, 1]} : vector<2x256xf32> to vector<1x256xf32>
    %cst_11 = arith.constant 0.000000e+00 : f32
    %10 = vector.broadcast %cst_11 : f32 to vector<4x256xf32>
    %11 = vector.extract_strided_slice %5 {offsets = [0, 111], sizes = [4, 256], strides = [1, 1]} : vector<4x512xf32> to vector<4x256xf32>
    %12 = vector.broadcast %8 : vector<1x256xf32> to vector<4x256xf32>
    %13 = arith.mulf %11, %12 : vector<4x256xf32>
    %14 = vector.extract_strided_slice %6 {offsets = [0, 0], sizes = [4, 4], strides = [1, 1]} : vector<4x36xf32> to vector<4x4xf32>
    %cst_12 = arith.constant dense<0.000000e+00> : vector<4x256xf32>
    %15 = tpu.matmul %14, %13, %cst_12 {dimension_numbers = #tpu.dot_dimension_numbers<[1], [0], [0], [1], [0, 0, 1, 1], [], []>} : vector<4x4xf32>, vector<4x256xf32>, vector<4x256xf32> -> vector<4x256xf32>
    %16 = arith.addf %10, %15 : vector<4x256xf32>
    %17 = vector.extract_strided_slice %5 {offsets = [0, 112], sizes = [4, 256], strides = [1, 1]} : vector<4x512xf32> to vector<4x256xf32>
    %18 = vector.extract_strided_slice %6 {offsets = [0, 4], sizes = [4, 4], strides = [1, 1]} : vector<4x36xf32> to vector<4x4xf32>
    %cst_13 = arith.constant dense<0.000000e+00> : vector<4x256xf32>
    %19 = tpu.matmul %18, %17, %cst_13 {dimension_numbers = #tpu.dot_dimension_numbers<[1], [0], [0], [1], [0, 0, 1, 1], [], []>} : vector<4x4xf32>, vector<4x256xf32>, vector<4x256xf32> -> vector<4x256xf32>
    %20 = arith.addf %16, %19 : vector<4x256xf32>
    %21 = vector.extract_strided_slice %5 {offsets = [0, 113], sizes = [4, 256], strides = [1, 1]} : vector<4x512xf32> to vector<4x256xf32>
    %22 = vector.broadcast %9 : vector<1x256xf32> to vector<4x256xf32>
    %23 = arith.mulf %21, %22 : vector<4x256xf32>
    %24 = vector.extract_strided_slice %6 {offsets = [0, 8], sizes = [4, 4], strides = [1, 1]} : vector<4x36xf32> to vector<4x4xf32>
    %cst_14 = arith.constant dense<0.000000e+00> : vector<4x256xf32>
    %25 = tpu.matmul %24, %23, %cst_14 {dimension_numbers = #tpu.dot_dimension_numbers<[1], [0], [0], [1], [0, 0, 1, 1], [], []>} : vector<4x4xf32>, vector<4x256xf32>, vector<4x256xf32> -> vector<4x256xf32>
    %26 = arith.addf %20, %25 : vector<4x256xf32>
    %27 = vector.extract_strided_slice %5 {offsets = [0, 127], sizes = [4, 256], strides = [1, 1]} : vector<4x512xf32> to vector<4x256xf32>
    %28 = vector.broadcast %8 : vector<1x256xf32> to vector<4x256xf32>
    %29 = arith.mulf %27, %28 : vector<4x256xf32>
    %30 = vector.extract_strided_slice %6 {offsets = [0, 12], sizes = [4, 4], strides = [1, 1]} : vector<4x36xf32> to vector<4x4xf32>
    %cst_15 = arith.constant dense<0.000000e+00> : vector<4x256xf32>
    %31 = tpu.matmul %30, %29, %cst_15 {dimension_numbers = #tpu.dot_dimension_numbers<[1], [0], [0], [1], [0, 0, 1, 1], [], []>} : vector<4x4xf32>, vector<4x256xf32>, vector<4x256xf32> -> vector<4x256xf32>
    %32 = arith.addf %26, %31 : vector<4x256xf32>
    %33 = vector.extract_strided_slice %5 {offsets = [0, 128], sizes = [4, 256], strides = [1, 1]} : vector<4x512xf32> to vector<4x256xf32>
    %34 = vector.extract_strided_slice %6 {offsets = [0, 16], sizes = [4, 4], strides = [1, 1]} : vector<4x36xf32> to vector<4x4xf32>
    %cst_16 = arith.constant dense<0.000000e+00> : vector<4x256xf32>
    %35 = tpu.matmul %34, %33, %cst_16 {dimension_numbers = #tpu.dot_dimension_numbers<[1], [0], [0], [1], [0, 0, 1, 1], [], []>} : vector<4x4xf32>, vector<4x256xf32>, vector<4x256xf32> -> vector<4x256xf32>
    %36 = arith.addf %32, %35 : vector<4x256xf32>
    %37 = vector.extract_strided_slice %5 {offsets = [0, 129], sizes = [4, 256], strides = [1, 1]} : vector<4x512xf32> to vector<4x256xf32>
    %38 = vector.broadcast %9 : vector<1x256xf32> to vector<4x256xf32>
    %39 = arith.mulf %37, %38 : vector<4x256xf32>
    %40 = vector.extract_strided_slice %6 {offsets = [0, 20], sizes = [4, 4], strides = [1, 1]} : vector<4x36xf32> to vector<4x4xf32>
    %cst_17 = arith.constant dense<0.000000e+00> : vector<4x256xf32>
    %41 = tpu.matmul %40, %39, %cst_17 {dimension_numbers = #tpu.dot_dimension_numbers<[1], [0], [0], [1], [0, 0, 1, 1], [], []>} : vector<4x4xf32>, vector<4x256xf32>, vector<4x256xf32> -> vector<4x256xf32>
    %42 = arith.addf %36, %41 : vector<4x256xf32>
    %43 = vector.extract_strided_slice %5 {offsets = [0, 143], sizes = [4, 256], strides = [1, 1]} : vector<4x512xf32> to vector<4x256xf32>
    %44 = vector.broadcast %8 : vector<1x256xf32> to vector<4x256xf32>
    %45 = arith.mulf %43, %44 : vector<4x256xf32>
    %46 = vector.extract_strided_slice %6 {offsets = [0, 24], sizes = [4, 4], strides = [1, 1]} : vector<4x36xf32> to vector<4x4xf32>
    %cst_18 = arith.constant dense<0.000000e+00> : vector<4x256xf32>
    %47 = tpu.matmul %46, %45, %cst_18 {dimension_numbers = #tpu.dot_dimension_numbers<[1], [0], [0], [1], [0, 0, 1, 1], [], []>} : vector<4x4xf32>, vector<4x256xf32>, vector<4x256xf32> -> vector<4x256xf32>
    %48 = arith.addf %42, %47 : vector<4x256xf32>
    %49 = vector.extract_strided_slice %5 {offsets = [0, 144], sizes = [4, 256], strides = [1, 1]} : vector<4x512xf32> to vector<4x256xf32>
    %50 = vector.extract_strided_slice %6 {offsets = [0, 28], sizes = [4, 4], strides = [1, 1]} : vector<4x36xf32> to vector<4x4xf32>
    %cst_19 = arith.constant dense<0.000000e+00> : vector<4x256xf32>
    %51 = tpu.matmul %50, %49, %cst_19 {dimension_numbers = #tpu.dot_dimension_numbers<[1], [0], [0], [1], [0, 0, 1, 1], [], []>} : vector<4x4xf32>, vector<4x256xf32>, vector<4x256xf32> -> vector<4x256xf32>
    %52 = arith.addf %48, %51 : vector<4x256xf32>
    %53 = vector.extract_strided_slice %5 {offsets = [0, 145], sizes = [4, 256], strides = [1, 1]} : vector<4x512xf32> to vector<4x256xf32>
    %54 = vector.broadcast %9 : vector<1x256xf32> to vector<4x256xf32>
    %55 = arith.mulf %53, %54 : vector<4x256xf32>
    %56 = vector.extract_strided_slice %6 {offsets = [0, 32], sizes = [4, 4], strides = [1, 1]} : vector<4x36xf32> to vector<4x4xf32>
    %cst_20 = arith.constant dense<0.000000e+00> : vector<4x256xf32>
    %57 = tpu.matmul %56, %55, %cst_20 {dimension_numbers = #tpu.dot_dimension_numbers<[1], [0], [0], [1], [0, 0, 1, 1], [], []>} : vector<4x4xf32>, vector<4x256xf32>, vector<4x256xf32> -> vector<4x256xf32>
    %58 = arith.addf %52, %57 : vector<4x256xf32>
    %c0_21 = arith.constant 0 : index
    %c0_22 = arith.constant 0 : index
    %59 = vector.load %arg3[%c0_21, %c0_22] : memref<4x1xf32, #tpu.memory_space<vmem>>, vector<4x1xf32>
    %60 = vector.broadcast %59 : vector<4x1xf32> to vector<4x256xf32>
    %61 = arith.addf %58, %60 : vector<4x256xf32>
    %cst_23 = arith.constant 0.000000e+00 : f32
    %62 = vector.broadcast %cst_23 : f32 to vector<4x256xf32>
    %63 = arith.cmpf oge, %61, %62 : vector<4x256xf32>
    %cst_24 = arith.constant 2.000000e-01 : f32
    %64 = vector.broadcast %cst_24 : f32 to vector<4x256xf32>
    %65 = arith.mulf %64, %61 : vector<4x256xf32>
    %66 = arith.select %63, %61, %65 : vector<4x256xi1>, vector<4x256xf32>
    %67 = vector.shape_cast %66 : vector<4x256xf32> to vector<1x4x256xf32>
    %c0_25 = arith.constant 0 : index
    %c0_26 = arith.constant 0 : index
    %c0_27 = arith.constant 0 : index
    %68 = vector.load %arg5[%c0_25, %c0_26, %c0_27] : memref<1x4x256xf32, #tpu.memory_space<vmem>>, vector<1x4x256xf32>
    tpu.vector_store %arg5[%c0_25, %c0_26, %c0_27], %67 {strides = array<i32>} : memref<1x4x256xf32, #tpu.memory_space<vmem>>, vector<1x4x256xf32>,
    return
  }
  func.func @transform_0(%arg0: i32) -> (i32, i32, i32) {
    %c0_i32 = arith.constant 0 : i32
    %c0_i32_0 = arith.constant 0 : i32
    %c0_i32_1 = arith.constant 0 : i32
    return %arg0, %c0_i32, %c0_i32_0 : i32, i32, i32
  }
  func.func @transform_1(%arg0: i32) -> (i32, i32) {
    %c0_i32 = arith.constant 0 : i32
    %c0_i32_0 = arith.constant 0 : i32
    %c0_i32_1 = arith.constant 0 : i32
    return %c0_i32, %c0_i32_0 : i32, i32
  }
  func.func @transform_2(%arg0: i32) -> (i32, i32) {
    %c0_i32 = arith.constant 0 : i32
    %c0_i32_0 = arith.constant 0 : i32
    %c0_i32_1 = arith.constant 0 : i32
    return %c0_i32, %c0_i32_0 : i32, i32
  }
  func.func @transform_3(%arg0: i32) -> (i32, i32) {
    %c0_i32 = arith.constant 0 : i32
    %c0_i32_0 = arith.constant 0 : i32
    %c0_i32_1 = arith.constant 0 : i32
    return %c0_i32, %c0_i32_0 : i32, i32
  }
  func.func @transform_4(%arg0: i32) -> (i32, i32, i32) {
    %c0_i32 = arith.constant 0 : i32
    %c0_i32_0 = arith.constant 0 : i32
    %c0_i32_1 = arith.constant 0 : i32
    return %arg0, %c0_i32, %c0_i32_0 : i32, i32, i32
  }
}

</mosaic_0001>

<bundles_post_ra>
// kernel: tpu_custom_call.1
= control target key start
LH: loop header
LB: loop body
LE: loop exit
PB: predicated region body
PF: predicated region fallthrough
CT: control target
= control target key end

     0   :  { %9 = vsyncpa [#allocation4], 0  ;;  %s1757_s0 = inlined_call_operand.hbm [shape: f32[2,4,256], index: 0, kind: input, shape index: {}]   ;;  %s1758_s1 = inlined_call_operand.vmem [shape: f32[4,36], index: 1, kind: input, shape index: {}]   ;;  %s1759_s2 = inlined_call_operand.vmem [shape: f32[4,1], index: 2, kind: input, shape index: {}]   ;;  %s1760_s3 = inlined_call_operand.vmem [shape: f32[2,256], index: 3, kind: input, shape index: {}]   ;;  %s1761_s4 = inlined_call_operand.hbm [shape: f32[2,4,256], index: 4, kind: output, shape index: {}]  }
   0x1   :  { %11 = vsyncpa [#allocation4 + $0x1], 0 }
   0x2   :  { %12 = vsyncpa [#allocation5], 0 }
   0x3   :  { %14 = vsyncpa [#allocation5 + $0x1], 0  ;;  %s1485_s15 = smov 0   ;;  %s1487_s16 = smov 0  }
   0x4   :  { %s1489_s17 = smov 0   ;;  %s1491_s18 = smov 0  }
   0x5 LB: > { %s1506_s19 = sadd.s32 4294967295, %s1439_s18   ;;  %s1218_s20 = sadd.s32 4294967294, %s1439_s18   ;;  %s1439_s18 = sphi %s1491_s18, %s1776_s18   ;;  %s1435_s17 = sphi %s1489_s17, %s1775_s17   ;;  %s1431_s16 = sphi %s1487_s16, %s1774_s16   ;;  %s1427_s15 = sphi %s1485_s15, %s1773_s15  }
   0x6   : > { %s1510_s21 = sadd.s32 1, %s1439_s18   ;;  %s27_s22 = sadd.s32 1, %s1435_s17 }
   0x7   : > { %s24_s23 = ssub.s32 %s1439_s18, %s1510_s21  ;;  %p34_p0 = scmp.ne.s32.totalorder %s1435_s17, %s1431_s16 }
   0x8   : > { %p25_p1 = scmp.eq.s32.totalorder %s24_s23, 0  ;;  %p35_p2 = scmp.eq.s32.totalorder %s1439_s18, 0 }
   0x9   : > { %p40_p3 = scmp.ne.s32.totalorder %s1431_s16, %s1427_s15  ;;  %p41_p4 = scmp.eq.s32.totalorder %s1506_s19, 0 }
   0xa   : > { %s1522_s24 = scalar_select %p25_p1, %s1435_s17, %s27_s22  }
   0xb   : > { %p1524_p5 = por %p35_p2, %p34_p0  ;;  %p1528_p6 = por %p41_p4, %p40_p3 }
   0xc   : > { %p127_p7 = scmp.eq.s32.totalorder %s1506_s19, 1  ;;  %p133_p8 = scmp.eq.s32.totalorder %s1218_s20, 1 }
   0xd   : > { %p1289_p10 = scmp.lt.s32.totalorder %s1439_s18, 2  ;;  %s162_s29 = sand.u32 1, %s1435_s17  }
   0xe   : > { %p1535_p11 = por %p127_p7, %p34_p0  ;;  %p1539_p12 = por %p133_p8, %p40_p3 }
   0xf   : > { %s1259_s30 = sshll.u32 %s1439_s18, 7  ;;  %s1221_s5 = sshll.u32 %s162_s29, 3 }
  0x10   : > { %s1765_s27 = scalar_select %p1535_p11, 1, 0 }
  0x11   : > { %s1766_s28 = scalar_select %p1539_p12, 1, 0 }
  0x12   : > { %s1548_s8 = scalar_lea.hbm %s1757_s0, %s1259_s30  ;;  %s166_s9 = scalar_lea.vmem [#allocation3], %s1221_s5 }
  0x13   : > { %s174_s10 = sshll.u32 %s166_s9, 4  ;;  %p1552_p13 = pnand %p1289_p10, %p1524_p5  ;;  %s1556_s10 = int_to_ptr.vmem [resolvable:$true] %s174_s10 }
  0x14   : > { %s163_s12 = scalar_lea.sflag [#allocation4], %s162_s29  ;;  %s1343_s13 = scalar_lea.hbm %s1548_s8, 128 }
  0x15   : > { %p1344_p2 = scmp.ne.s32.totalorder %s1548_s8, %s1343_s13  ;;  %p1345_p3 = pneg %p1552_p13 }
  0x16   : > { %s1348_s22 = scalar_lea.hbm %s1757_s0, 256  ;;  %p1349_p5 = scmp.lt.u32.totalorder %s1548_s8, %s1757_s0 }
  0x17   : > { %p1346_p4 = pnand %p1345_p3, %p1344_p2  ;;  %p1350_p8 = scmp.lt.u32.totalorder %s1348_s22, %s1343_s13 }
  0x18   : > { %p1352_p9 = scmp.lt.u32.totalorder %s1343_s13, %s1548_s8 }
  0x19   : > { %p1347_p7 = pneg %p1346_p4  ;;  %p1351_p10 = por %p1350_p8, %p1349_p5 }
  0x1b   : > { %p1353_p0 = por %p1352_p9, %p1351_p10 }
  0x1d   : > { %p1354_p1 = pnand %p1353_p0, %p1347_p7 }
  0x1f   : > { %1357 = shalt.err (!%p1354_p1)
}
  0x20   : > { %s1358_s29 = scalar_lea.vmem %s1556_s10, 128  ;;  %s1441_s30 = smov [#allocation3]  }
  0x21   : > { %p1359_p2 = scmp.ne.s32.totalorder %s1556_s10, %s1358_s29  ;;  %s1363_s5 = sshll.u32 %s1441_s30, 4  ;;  %s1364_s5 = int_to_ptr.vmem [resolvable:$false] %s1363_s5 }
  0x22   : > { %s1365_s6 = scalar_lea.vmem %s1364_s5, 256  ;;  %p1366_p11 = scmp.lt.s32.totalorder %s1556_s10, %s1364_s5 }
  0x23   : > { %p1361_p4 = pnand %p1359_p2, %p1345_p3  ;;  %p1367_p5 = scmp.lt.s32.totalorder %s1365_s6, %s1358_s29 }
  0x25   : > { %p1362_p12 = pneg %p1361_p4  ;;  %p1368_p8 = por %p1367_p5, %p1366_p11 }
  0x27   : > { %p1369_p9 = pnand %p1368_p8, %p1362_p12 }
  0x29   : > { %1372 = shalt.err (!%p1369_p9)
}
  0x2a   : > { %1284 = dma.hbm_to_vmem [thread:$0]  (!%p1552_p13), %s1548_s8, 128, %s1556_s10, %s163_s12  }
  0x2b   : > { %p1768_p0 = scmp.lt.s32.totalorder %s1439_s18, 3  ;;  %p1769_p1 = scmp.ge.s32.totalorder %s1439_s18, 1 }
  0x2d   : > { %p180_p3 = pnand %p1769_p1, %p1768_p0 }
  0x2e   : > { %s1590_s7 = sand.u32 (!%p180_p3), 1, %s1431_s16  }
  0x2f   : > { %183 = sbr.rel (%p180_p3) target bundleno = 566 (0x236), region = 36  ;;  %s1225_s9 = sshll.u32 (!%p180_p3), %s1590_s7, 3 }
  0x30   : > { %s186_s13 = scalar_lea.sflag (!%p180_p3), [#allocation4], %s1590_s7  ;;  %s189_s11 = scalar_lea.vmem (!%p180_p3), [#allocation3], %s1225_s9 }
  0x36   : > { %1418 = dma.done.wait (%p1528_p6), %s186_s13, 128  }
  0x37   : > { %1420 = vsyncadd (%p1528_p6), %s186_s13, 4294967168  ;;  %v223_v0 = vlaneseq  ;;  %v1442_v1 = vmov 0.0   ;;  %v216_v7 = vld [vmem:[%s189_s11] sm:$0xff]  ;;  %v221_v8 = vld [vmem:[%s1760_s3] sm:$0xf]  ;;  %s1443_s26 = smov 111  }
  0x38   : > { %214 = vst [vmem:[#allocation2] sm:$0xff] %v1442_v1  ;;  %215 = vst [vmem:[#allocation2 + $0x8] sm:$0xff] %v1442_v1  ;;  %733 = vmatprep.mubr.f32.mxu0 %v1442_v1  ;;  %340 = vmatprep.mubr.f32.mxu1 %v1442_v1  ;;  %s1444_s12 = smov 127   ;;  %v1617_v19 = vld [vmem:[%s1758_s1] sm:$0xf]  ;;  %s1445_s22 = smov 113  }
  0x39   : > { %v224_v2 = vshrl.u32 %v223_v0, 7  ;;  %217 = vst [vmem:[#allocation2 + $0x4] sm:$0xff] %v216_v7  ;;  %s1446_s23 = smov 112   ;;  %s1447_s25 = smov 16   ;;  %vm271_vm0 = vcmask 1043456   ;;  %vm247_vm1 = vcmask 908288  }
  0x3a   : > { %s1448_s29 = smov 124   ;;  %s1449_s30 = smov 108   ;;  %vm268_vm2 = vcmask 31744   ;;  %vm460_vm3 = vcmask 924672   ;;  %vm562_vm4 = vcmask 1039360   ;;  %vm265_vm5 = vcmask 130048  }
  0x3b   : > { %v225_v3 = vsub.s32 0, %v224_v2  ;;  %v229_v4 = vsub.s32 2, %v224_v2  ;;  %v438_v5 = vsub.s32 1, %v224_v2  ;;  %v442_v6 = vsub.s32 3, %v224_v2  ;;  %s1450_s5 = smov 104   ;;  %s1451_s6 = smov 17  }
  0x3c   : > { %s1452_s13 = smov 15   ;;  %s1453_s11 = smov 100   ;;  %v1456_v60 = vmov 0   ;;  %v1114_v2 = vld [vmem:[%s1759_s2] sm:$0xf]  ;;  %vm939_vm6 = vcmask 916480  }
  0x3d   : > { %v226_v9 = vrot.slane %v221_v8, %v225_v3  ;;  %v230_v10 = vrot.slane %v221_v8, %v229_v4  ;;  %v439_v11 = vrot.slane %v221_v8, %v438_v5  ;;  %v443_v12 = vrot.slane %v221_v8, %v442_v6  ;;  %s1454_s8 = smov 120   ;;  %s1455_s10 = smov 1   ;;  %1340 = vset.pattern.permute.xlu0 %v1456_v60 }
  0x3e   : > { %s1458_s20 = smov 96   ;;  %vm356_vm7 = vcmask 138240   ;;  %vm477_vm8 = vcmask 121856   ;;  %vm579_vm9 = vcmask 7168   ;;  %p1770_p11 = scmp.ne.s32.totalorder %s1765_s27, 0 }
  0x3f   : > { %v236_v13 = vrot.slane %v226_v9, %v225_v3  ;;  %v240_v14 = vrot.slane %v230_v10, %v225_v3  ;;  %v449_v15 = vrot.slane %v439_v11, %v438_v5  ;;  %v453_v16 = vrot.slane %v443_v12, %v438_v5 }
  0x40   : > { %v1621_v20 = vld [vmem:[#allocation2 + $0x8] sm:$0xff]  ;;  %v1623_v21 = vld [vmem:[#allocation2] sm:$0xff] }
  0x41   : > { %v1607_v17 = vcombine.low %v236_v13, %v240_v14  ;;  %v1611_v18 = vcombine.low %v449_v15, %v453_v16  ;;  %v258_v22 = vcombine.high %v1623_v21, %v1623_v21  ;;  %1239 = vmatprep.subr.msk.mxu0 %vm271_vm0, %v1621_v20  ;;  %v932_v23 = vcombine.high %v1621_v20, %v1621_v20 }
  0x43   : > { %244 = vrot.lane.b32.xlu0 %v1607_v17, %s1443_s26  ;;  %559 = vrot.lane.b32.xlu1 %v1607_v17, %s1444_s12 }
  0x44   : > { %1240 = vmatpush1.msk.msra.mxu0 %vm271_vm0, %v258_v22 }
  0x47   : > { %457 = vrot.lane.b32.xlu0 %v1611_v18, %s1445_s22  ;;  %661 = vrot.lane.b32.xlu1 %v1617_v19, %s1446_s23 }
  0x4b   : > { %744 = vrot.lane.b32.xlu0 %v1621_v20, %s1444_s12  ;;  %742 = vrot.lane.b32.xlu1 %v1623_v21, %s1444_s12 }
  0x4f   : > { %259 = vrot.lane.b32.xlu0 %v1623_v21, %s1447_s25  ;;  %263 = vrot.lane.b32.xlu1 %v1621_v20, %s1447_s25 }
  0x53   : > { %261 = vrot.lane.b32.xlu0 %v258_v22, %s1447_s25  ;;  %836 = vrot.lane.b32.xlu1 %v1623_v21, %s1445_s22 }
  0x57   : > { %838 = vrot.lane.b32.xlu0 %v1621_v20, %s1445_s22  ;;  %254 = vrot.lane.b32.xlu1 %v1617_v19, %s1448_s29  ;;  %s1260_s22 = sshll.u32 %s1506_s19, 7  ;;  %s1459_s19 = smov [#allocation6]  }
  0x5b   : > { %753 = vrot.lane.b32.xlu0 %v1617_v19, %s1449_s30  ;;  %935 = vrot.lane.b32.xlu1 %v1621_v20, %s1446_s23 }
  0x5f   : > { %847 = vrot.lane.b32.xlu0 %v1617_v19, %s1450_s5  ;;  %1021 = vrot.lane.b32.xlu1 %v1623_v21, %s1443_s26  ;;  %s1713_s5 = scalar_lea.hbm %s1761_s4, %s1260_s22 }
  0x63   : > { %937 = vrot.lane.b32.xlu0 %v932_v23, %s1446_s23 }
  0x67   : > { %933 = vrot.lane.b32.xlu0 %v258_v22, %s1446_s23  ;;  %s213_s23 = scalar_lea.vmem [#allocation6], %s1225_s9  ;;  %s1377_s9 = sshll.u32 %s1459_s19, 4  ;;  %s1378_s9 = int_to_ptr.vmem [resolvable:$false] %s1377_s9 }
  0x68   : > { %s1148_s25 = sshll.u32 %s213_s23, 4  ;;  %s1715_s25 = int_to_ptr.vmem [resolvable:$true] %s1148_s25 }
  0x69   : > { %p1380_p7 = scmp.lt.s32.totalorder %s1715_s25, %s1378_s9 }
  0xb5   : > { %v245_v24 = vpop.permute.xlu0 %244  ;;  %v560_v25 = vpop.permute.xlu1 %559 }
  0xb6   : > { %v246_v26 = vrot.slane %v245_v24, 4  ;;  %v561_v46 = vrot.slane %v560_v25, 4 }
  0xb8   : > { %v248_v27 = vsel %vm247_vm1, %v246_v26, %v245_v24  ;;  %v252_v28 = vmul.f32 %v246_v26, %v1621_v20  ;;  %v567_v50 = vmul.f32 %v561_v46, %v1621_v20  ;;  %v563_v57 = vsel %vm562_vm4, %v561_v46, %v560_v25 }
  0xb9   : > { %v251_v29 = vmul.f32 %v248_v27, %v1623_v21  ;;  %v458_v30 = vpop.permute.xlu0 %457  ;;  %v662_v31 = vpop.permute.xlu1 %661  ;;  %v566_v61 = vmul.f32 %v563_v57, %v1623_v21 }
  0xba   : > { %v459_v32 = vrot.slane %v458_v30, 4  ;;  %354 = vrot.lane.b32.xlu0 %v252_v28, %s1451_s6  ;;  %1241 = vmatmul.mubr.msk.f32.vlgmr.msra.gmra.mrb[0].mxu0 %vm268_vm2, %v662_v31 }
  0xbb   : > { %350 = vrot.lane.b32.xlu1 %v251_v29, %s1451_s6  ;;  %827 = vmatprep.mubr.f32.mxu0 %v1442_v1  ;;  %v349_v41 = vcombine.high %v251_v29, %v251_v29  ;;  %v572_v4 = vcombine.high %v566_v61, %v566_v61 }
  0xbc   : > { %v461_v33 = vsel %vm460_vm3, %v459_v32, %v458_v30  ;;  %v465_v39 = vmul.f32 %v459_v32, %v1621_v20 }
  0xbd   : > { %v464_v34 = vmul.f32 %v461_v33, %v1623_v21  ;;  %v745_v35 = vpop.permute.xlu0 %744  ;;  %v743_v36 = vpop.permute.xlu1 %742 }
  0xbe   : > { %1023 = vrot.lane.b32.xlu0 %v1621_v20, %s1443_s26  ;;  %v747_v37 = vrot.slane %v745_v35, 4  ;;  %v746_v38 = vrot.slane %v743_v36, 4  ;;  %s1457_s26 = smov 116  }
  0xbf   : > { %471 = vrot.lane.b32.xlu1 %v464_v34, %s1452_s13  ;;  %v470_v54 = vcombine.high %v464_v34, %v464_v34 }
  0xc0   : > { %v748_v40 = vsel %vm271_vm0, %v746_v38, %v747_v37 }
  0xc1   : > { %v260_v42 = vpop.permute.xlu0 %259  ;;  %v749_v43 = vsel %vm562_vm4, %v748_v40, %v745_v35  ;;  %v264_v44 = vpop.permute.xlu1 %263 }
  0xc2   : > { %475 = vrot.lane.b32.xlu0 %v465_v39, %s1452_s13  ;;  %v752_v45 = vmul.f32 %v749_v43, %v1611_v18 }
  0xc3   : > { %352 = vrot.lane.b32.xlu1 %v349_v41, %s1451_s6  ;;  %s1134_s6 = scalar_lea.sflag [#allocation5], %s1590_s7 }
  0xc4   : > { %v756_v47 = vcombine.high %v752_v45, %v752_v45 }
  0xc5   : > { %v262_v48 = vpop.permute.xlu0 %261  ;;  %v837_v49 = vpop.permute.xlu1 %836 }
  0xc6   : > { %930 = vrot.lane.b32.xlu0 %v1617_v19, %s1453_s11  ;;  %1242 = vmatprep.subr.msk.mxu0 %vm271_vm0, %v756_v47  ;;  %v267_v51 = vsel %vm265_vm5, %v262_v48, %v264_v44  ;;  %v266_v52 = vsel %vm265_vm5, %v260_v42, %v262_v48  ;;  %v840_v53 = vrot.slane %v837_v49, 4  ;;  %s1379_s11 = scalar_lea.vmem %s1378_s9, 256 }
  0xc7   : > { %466 = vrot.lane.b32.xlu1 %v1617_v19, %s1454_s8  ;;  %1243 = vmatpush1.msk.msra.mxu0 %vm271_vm0, %v752_v45 }
  0xc8   : > { %1227 = vmatprep.subr.msk.mxu1 %vm271_vm0, %v267_v51 }
  0xc9   : > { %v839_v55 = vpop.permute.xlu0 %838  ;;  %1228 = vmatpush1.msk.msra.mxu1 %vm271_vm0, %v266_v52  ;;  %v255_v56 = vpop.permute.xlu1 %254 }
  0xca   : > { %577 = vrot.lane.b32.xlu0 %v567_v50, %s1455_s10  ;;  %v841_v58 = vrot.slane %v839_v55, 4  ;;  %1229 = vmatmul.mubr.msk.f32.vlgmr.msra.gmra.mrb[0].mxu1 %vm268_vm2, %v255_v56 }
  0xcb   : > { %473 = vrot.lane.b32.xlu1 %v470_v54, %s1452_s13  ;;  %429 = vmatprep.mubr.f32.mxu1 %v1442_v1  ;;  %s1373_s13 = scalar_lea.vmem %s1715_s25, 128 }
  0xcc   : > { %v842_v59 = vsel %vm271_vm0, %v840_v53, %v841_v58  ;;  %p1374_p6 = scmp.ne.s32.totalorder %s1715_s25, %s1373_s13  ;;  %p1381_p10 = scmp.lt.s32.totalorder %s1379_s11, %s1373_s13 }
  0xcd   : > { %v754_v62 = vpop.permute.xlu0 %753  ;;  %v843_v63 = vsel %vm460_vm3, %v842_v59, %v839_v55  ;;  %v936_v6 = vpop.permute.xlu1 %935 }
  0xce   : > { %568 = vrot.lane.b32.xlu0 %v1617_v19, %s1457_s26  ;;  %v846_v0 = vmul.f32 %v843_v63, %v1607_v17  ;;  %1244 = vmatmul.mubr.msk.f32.vlgmr.msra.gmra.mrb[0].mxu0 %vm268_vm2, %v754_v62  ;;  %p1375_p12 = pnand %p1374_p6, %p1770_p11  ;;  %p1382_p2 = por %p1381_p10, %p1380_p7 }
  0xcf   : > { %573 = vrot.lane.b32.xlu1 %v566_v61, %s1455_s10  ;;  %921 = vmatprep.mubr.f32.mxu0 %v1442_v1 }
  0xd0   : > { %v850_v3 = vcombine.high %v846_v0, %v846_v0  ;;  %p1376_p13 = pneg %p1375_p12 }
  0xd1   : > { %v848_v5 = vpop.permute.xlu0 %847  ;;  %v1022_v11 = vpop.permute.xlu1 %1021 }
  0xd2   : > { %1245 = vmatprep.subr.msk.mxu0 %vm271_vm0, %v850_v3  ;;  %1117 = vperm.xlu0 %1340, %v1114_v2   ;;  %v1025_v15 = vrot.slane %v1022_v11, 4  ;;  %p1383_p4 = pnand %p1382_p2, %p1376_p13 }
  0xd3   : > { %575 = vrot.lane.b32.xlu1 %v572_v4, %s1455_s10  ;;  %1246 = vmatpush1.msk.msra.mxu0 %vm271_vm0, %v846_v0 }
  0xd5   : > { %v938_v7 = vpop.permute.xlu0 %937 }
  0xd6   : > { %v941_v8 = vsel %vm939_vm6, %v936_v6, %v938_v7  ;;  %1247 = vmatmul.mubr.msk.f32.vlgmr.msra.gmra.mrb[0].mxu0 %vm268_vm2, %v848_v5 }
  0xd7   : > { %1031 = vrot.lane.b32.xlu1 %v1617_v19, %s1458_s20  ;;  %1248 = vmatprep.subr.msk.mxu0 %vm271_vm0, %v941_v8 }
  0xd8   : > { %1012 = vmatprep.mubr.f32.mxu0 %v1442_v1 }
  0xd9   : > { %v934_v9 = vpop.permute.xlu0 %933 }
  0xda   : > { %v940_v10 = vsel %vm939_vm6, %v934_v9, %v936_v6 }
  0xdb   : > { %1249 = vmatpush1.msk.msra.mxu0 %vm271_vm0, %v940_v10 }
 0x12c   : > { %v355_v12 = vpop.permute.xlu0 %354 }
 0x12d   : > { %v351_v13 = vpop.permute.xlu1 %350 }
 0x130   : > { %v1024_v14 = vpop.permute.xlu0 %1023 }
 0x131   : > { %v1026_v16 = vrot.slane %v1024_v14, 4  ;;  %v472_v17 = vpop.permute.xlu1 %471 }
 0x133   : > { %v1027_v20 = vsel %vm271_vm0, %v1025_v15, %v1026_v16 }
 0x134   : > { %v1028_v21 = vsel %vm247_vm1, %v1027_v20, %v1024_v14  ;;  %v476_v22 = vpop.permute.xlu0 %475 }
 0x135   : > { %v1030_v23 = vmul.f32 %v1028_v21, %v1611_v18  ;;  %v353_v24 = vpop.permute.xlu1 %352 }
 0x136   : > { %v357_v25 = vsel %vm356_vm7, %v351_v13, %v353_v24  ;;  %v358_v26 = vsel %vm356_vm7, %v353_v24, %v355_v12 }
 0x137   : > { %v1034_v27 = vcombine.high %v1030_v23, %v1030_v23  ;;  %1230 = vmatprep.subr.msk.mxu1 %vm271_vm0, %v358_v26 }
 0x138   : > { %1231 = vmatpush1.msk.msra.mxu1 %vm271_vm0, %v357_v25  ;;  %v931_v28 = vpop.permute.xlu0 %930 }
 0x139   : > { %1232 = vmatmul.mubr.msk.f32.vlgmr.msra.gmra.mrb[0].mxu1 %vm268_vm2, %v1617_v19  ;;  %1251 = vmatprep.subr.msk.mxu0 %vm271_vm0, %v1034_v27  ;;  %v467_v29 = vpop.permute.xlu1 %466 }
 0x13a   : > { %1250 = vmatmul.mubr.msk.f32.vlgmr.msra.gmra.mrb[0].mxu0 %vm268_vm2, %v931_v28  ;;  %550 = vmatprep.mubr.f32.mxu1 %v1442_v1 }
 0x13b   : > { %1252 = vmatpush1.msk.msra.mxu0 %vm271_vm0, %v1030_v23  ;;  %1105 = vmatprep.mubr.f32.mxu0 %v1442_v1 }
 0x13c   : > { %v578_v32 = vpop.permute.xlu0 %577 }
 0x13d   : > { %v474_v18 = vpop.permute.xlu1 %473 }
 0x13e   : > { %v478_v30 = vsel %vm477_vm8, %v472_v17, %v474_v18  ;;  %v479_v31 = vsel %vm477_vm8, %v474_v18, %v476_v22 }
 0x13f   : > { %1233 = vmatprep.subr.msk.mxu1 %vm271_vm0, %v479_v31 }
 0x140   : > { %1234 = vmatpush1.msk.msra.mxu1 %vm271_vm0, %v478_v30  ;;  %v569_v36 = vpop.permute.xlu0 %568 }
 0x141   : > { %1235 = vmatmul.mubr.msk.f32.vlgmr.msra.gmra.mrb[0].mxu1 %vm268_vm2, %v467_v29  ;;  %v574_v19 = vpop.permute.xlu1 %573 }
 0x142   : > { %652 = vmatprep.mubr.f32.mxu1 %v1442_v1 }
 0x145   : > { %v576_v33 = vpop.permute.xlu1 %575 }
 0x146   : > { %v580_v34 = vsel %vm579_vm9, %v574_v19, %v576_v33  ;;  %v581_v35 = vsel %vm579_vm9, %v576_v33, %v578_v32 }
 0x147   : > { %1236 = vmatprep.subr.msk.mxu1 %vm271_vm0, %v581_v35 }
 0x148   : > { %1237 = vmatpush1.msk.msra.mxu1 %vm271_vm0, %v580_v34 }
 0x149   : > { %1238 = vmatmul.mubr.msk.f32.vlgmr.msra.gmra.mrb[0].mxu1 %vm268_vm2, %v569_v36  ;;  %v1032_v37 = vpop.permute.xlu1 %1031 }
 0x14a   : > { %1253 = vmatmul.mubr.msk.f32.vlgmr.msra.gmra.mrb[0].mxu0 %vm268_vm2, %v1032_v37 }
 0x151   : > { %v1118_v39 = vpop.permute.xlu0 %1117 }
 0x21c   : > { %v654_v38 = vpop.f32.mrb[0].mxu1 }
 0x21d   : > { %v656_v40 = vpop.f32.mrb[1].mxu1  ;;  %v1107_v1 = vpop.f32.mrb[0].mxu0 }
 0x21e   : > { %v1261_v41 = vadd.f32 %v1107_v1, %v654_v38  ;;  %v1109_v42 = vpop.f32.mrb[1].mxu0 }
 0x21f   : > { %v1262_v43 = vadd.f32 %v1109_v42, %v656_v40 }
 0x220   : > { %v1120_v44 = vadd.f32 %v1261_v41, %v1118_v39 }
 0x221   : > { %v1121_v45 = vadd.f32 %v1262_v43, %v1118_v39 }
 0x222   : > { %vm1122_vm10 = vcmp.ge.f32.partialorder %v1120_v44, 0.0  ;;  %v1124_v46 = vmul.f32 0.2, %v1120_v44 }
 0x223   : > { %vm1123_vm11 = vcmp.ge.f32.partialorder %v1121_v45, 0.0  ;;  %v1125_v47 = vmul.f32 0.2, %v1121_v45 }
 0x224   : > { %v1126_v48 = vsel %vm1122_vm10, %v1120_v44, %v1124_v46 }
 0x225   : > { %v1127_v49 = vsel %vm1123_vm11, %v1121_v45, %v1125_v47 }
 0x226   : > { %v1130_v50 = vcombine.low %v1126_v48, %v1127_v49 }
 0x228   : > { %1132 = vst [vmem:[%s213_s23] sm:$0xff] %v1130_v50 }
 0x229   : > { %1386 = shalt.err (!%p1383_p4)
}
 0x22a   : > { %s1387_s7 = scalar_lea.hbm %s1713_s5, 128  ;;  %s1391_s26 = scalar_lea.hbm %s1761_s4, 256 }
 0x22b   : > { %p1388_p5 = scmp.ne.s32.totalorder %s1713_s5, %s1387_s7  ;;  %p1392_p0 = scmp.lt.u32.totalorder %s1713_s5, %s1761_s4 }
 0x22c   : > { %p1393_p1 = scmp.lt.u32.totalorder %s1391_s26, %s1387_s7  ;;  %p1395_p6 = scmp.lt.u32.totalorder %s1387_s7, %s1713_s5 }
 0x22d   : > { %p1389_p8 = pnand %p1388_p5, %p1770_p11 }
 0x22e   : > { %p1394_p3 = por %p1393_p1, %p1392_p0 }
 0x22f   : > { %p1390_p9 = pneg %p1389_p8 }
 0x230   : > { %p1396_p12 = por %p1395_p6, %p1394_p3 }
 0x232   : > { %p1397_p13 = pnand %p1396_p12, %p1390_p9 }
 0x234   : > { %1400 = shalt.err (!%p1397_p13)
}
 0x235   : > { %1279 = dma.vmem_to_hbm [thread:$0]  (%p1770_p11), %s1715_s25, 128, %s1713_s5, %s1134_s6  }
 0x236 PF: > { %s1160_s20 = sand.u32 1, %s1427_s15   ;;  %p1771_p7 = scmp.ne.s32.totalorder %s1766_s28, 0 }
 0x237   : > { %p1772_p10 = scmp.ge.s32.totalorder %s1439_s18, 2  ;;  %s1161_s22 = scalar_lea.sflag [#allocation5], %s1160_s20 }
 0x239   : > { %p1286_p2 = pnand %p1772_p10, %p1771_p7 }
 0x23b   : > { %1422 = dma.done.wait (!%p1286_p2), %s1161_s22, 128  }
 0x23c   : > { %1424 = vsyncadd (!%p1286_p2), %s1161_s22, 4294967168  ;;  %p17_p4 = scmp.ge.s32.totalorder %s1510_s21, 4   ;;  %s1773_s15 = smov %s1431_s16 }
 0x23d   : > { %s1774_s16 = smov %s1435_s17  ;;  %s1775_s17 = smov %s1522_s24 }
 0x23e   : > { %s1776_s18 = smov %s1510_s21  ;;  %19 = sbr.rel (!%p17_p4) target bundleno = 5 (0x5), region = 81 }
 0x245   :  { %1166 = vsyncpa [#allocation4], 1 }
 0x246   :  { %1168 = vsyncpa [#allocation4 + $0x1], 1 }
 0x247   :  { %1169 = vsyncpa [#allocation5], 1 }
 0x248   :  { %1171 = vsyncpa [#allocation5 + $0x1], 1 }

</bundles_post_ra>
